<compile_context>
chip_gen: v6e
topology: v6e:2x2x1
jax: 0.10.0
libtpu: 0.0.40
codegen_flags: <defaults>
</compile_context>

<pallas_src>
import functools

import jax
import jax.numpy as jnp
import numpy as np
from jax.experimental import pallas as pl
from jax.experimental.pallas import tpu as pltpu


def attention_propagation_kernel(x1_ref, x2_ref, wp_ref, out_ref, *,
                                 B, N, M, C, head, head_dim):
    """x1_ref: (B*N, C) motion1 rows, x2_ref: (B*M, C) motion2 rows,
    wp_ref: packed/fused parameter block, out_ref: (B*N, C_pad) lane-dense output."""
    d = head_dim

    x1 = x1_ref[...]                     # (B*N, C)
    x2 = x2_ref[...]                     # (B*M, C)

    # ---- unpack fused parameters (static sub-block loads of the packed block) ----
    wq   = wp_ref[0 * C:1 * C, :C]       # (C, C)   attention scale pre-folded
    wkv  = wp_ref[1 * C:2 * C, :]        # (C, 2C)  [Wk | Wv]
    w1a  = wp_ref[2 * C:3 * C, :]        # (C, 2C)  motion1 branch of cat_filter conv1 (BN fused)
    wadd = wp_ref[3 * C:4 * C, :]        # (C, 2C)  Wmh @ W1b (mh_filter folded in)
    w2   = wp_ref[4 * C:6 * C, :C]       # (2C, C)  cat_filter conv2
    bq   = wp_ref[6 * C + 0:6 * C + 1, :C]   # (1, C)
    bkv  = wp_ref[6 * C + 1:6 * C + 2, :]    # (1, 2C)
    b1t  = wp_ref[6 * C + 2:6 * C + 3, :]    # (1, 2C)  b1(BN-fused) + bmh @ W1b
    b2   = wp_ref[6 * C + 3:6 * C + 4, :C]   # (1, C)

    # ---- fused Q and K|V projections (1x1 convs as row matmuls, batch folded) ----
    q  = jnp.dot(x1, wq,  preferred_element_type=jnp.float32) + bq    # (B*N, C), pre-scaled
    kv = jnp.dot(x2, wkv, preferred_element_type=jnp.float32) + bkv   # (B*M, 2C)
    k, v = kv[:, :C], kv[:, C:]

    # ---- multi-head attention over a merged batch axis g = h*B + b ----
    q3 = q.reshape(B, N, C)
    k3 = k.reshape(B, M, C)
    v3 = v.reshape(B, M, C)
    qg = jnp.concatenate([q3[:, :, h * d:(h + 1) * d] for h in range(head)], axis=0)  # (G,N,d)
    kg = jnp.concatenate([k3[:, :, h * d:(h + 1) * d] for h in range(head)], axis=0)  # (G,M,d)
    vg = jnp.concatenate([v3[:, :, h * d:(h + 1) * d] for h in range(head)], axis=0)  # (G,M,d)

    s = jnp.einsum('gnd,gmd->gnm', qg, kg, preferred_element_type=jnp.float32)  # (G,N,M)
    s = s - jnp.max(s, axis=-1, keepdims=True)
    e = jnp.exp(s)
    p = e * pl.reciprocal(jnp.sum(e, axis=-1, keepdims=True), approx=True)      # softmax over M
    og = jnp.einsum('gnm,gmd->gnd', p, vg, preferred_element_type=jnp.float32)  # (G,N,d)

    # ---- cat_filter conv1 (+ fused BN, + folded mh_filter); no concatenates ----
    h1 = jnp.dot(x1, w1a, preferred_element_type=jnp.float32) + b1t             # (B*N, 2C)
    for h in range(head):   # accumulate each head's output straight through Wmh @ W1b
        h1 = h1 + jnp.dot(og[h * B:(h + 1) * B].reshape(B * N, d),
                          wadd[h * d:(h + 1) * d, :],
                          preferred_element_type=jnp.float32)
    h1 = jnp.maximum(h1, 0.0)

    # ---- cat_filter conv2 + residual ----
    out = x1 + jnp.dot(h1, w2, preferred_element_type=jnp.float32) + b2         # (B*N, C)

    # Lane-dense store: widen to the padded output width with zero lanes (no cross-lane
    # data movement), so the store is an unmasked full-width vst.
    pad = out_ref.shape[1] - C
    if pad:
        out = jnp.concatenate([out, jnp.zeros((out.shape[0], pad), out.dtype)], axis=1)
    out_ref[...] = out.astype(out_ref.dtype)


def _fuse_bn(w, b, gamma, beta, mean, var, eps=1e-5):
    # y = gamma * (x - mean) / sqrt(var + eps) + beta, applied after x = in @ w + b
    scale = gamma / jnp.sqrt(var + eps)
    return w * scale[None, :], b * scale + (beta - mean * scale)


def pack_params(params, C, head):
    """Host-side parameter glue: fuse/fold everything linear and pack all weights and
    biases into a single (rows, 2C) f32 block (one DMA instead of 14).

    Row layout:
      [0,C)    Wq * 1/sqrt(d)        [C,2C)   [Wk | Wv]
      [2C,3C)  W1a (BN-fused)        [3C,4C)  Wmh @ W1b
      [4C,6C)  W2                    row 6C   bq * 1/sqrt(d)
      row 6C+1 [bk | bv]             row 6C+2 b1(BN-fused) + bmh @ W1b
      row 6C+3 b2                    (zero-padded to 2C lanes and a multiple of 8 rows)
    """
    C2 = 2 * C
    head_dim = C // head
    scale = 1.0 / (head_dim ** 0.5)

    w1f, b1f = _fuse_bn(params["w1"], params["b1"], params["bn_gamma"],
                        params["bn_beta"], params["bn_mean"], params["bn_var"])
    w1a, w1b = w1f[:C, :], w1f[C:, :]
    wq, bq = params["wq"] * scale, params["bq"] * scale
    wkv = jnp.concatenate([params["wk"], params["wv"]], axis=1)
    bkv = jnp.concatenate([params["bk"], params["bv"]])
    wadd = params["wmh"] @ w1b
    b1t = b1f + params["bmh"] @ w1b

    def pad_lanes(x):
        return jnp.pad(x, ((0, 0), (0, C2 - x.shape[1])))

    wp = jnp.concatenate(
        [pad_lanes(wq), wkv, w1a, wadd, pad_lanes(params["w2"]),
         pad_lanes(bq[None, :]), bkv[None, :], b1t[None, :],
         pad_lanes(params["b2"][None, :])], axis=0).astype(jnp.float32)
    wp = jnp.pad(wp, ((0, (-wp.shape[0]) % 8), (0, 0)))
    return wp


def attention_propagation(motion1, motion2, params, *, head):
    """motion1: (B, N, C), motion2: (B, M, C), channels-last layout."""
    B, N, C = motion1.shape
    _, M, _ = motion2.shape
    head_dim = C // head

    wp = pack_params(params, C, head)
    x1 = motion1.reshape(B * N, C)          # fold batch into matmul rows
    x2 = motion2.reshape(B * M, C)
    C_pad = ((C + 127) // 128) * 128        # lane-dense output width -> unmasked stores

    kernel = functools.partial(attention_propagation_kernel,
                               B=B, N=N, M=M, C=C, head=head, head_dim=head_dim)

    out = pl.pallas_call(
        kernel,
        out_shape=jax.ShapeDtypeStruct((B * N, C_pad), motion1.dtype),
        in_specs=[pl.BlockSpec(memory_space=pltpu.MemorySpace.VMEM)] * 3,
        out_specs=pl.BlockSpec(memory_space=pltpu.MemorySpace.VMEM),
    )(x1, x2, wp)
    return out[:, :C].reshape(B, N, C)


def reference(motion1, motion2, params, *, head, eps=1e-5):
    """Pure-JAX mirror of the PyTorch forward (eval-mode BatchNorm), channels-last."""
    B, N, C = motion1.shape
    d = C // head

    def conv(x, w, b):          # x: (B, L, Cin), w: (Cin, Cout)
        return jnp.einsum("blc,cd->bld", x, w) + b

    q = conv(motion1, params["wq"], params["bq"]).reshape(B, N, head, d)
    k = conv(motion2, params["wk"], params["bk"]).reshape(B, -1, head, d)
    v = conv(motion2, params["wv"], params["bv"]).reshape(B, -1, head, d)
    score = jnp.einsum("bnhd,bmhd->bhnm", q, k) / (d ** 0.5)
    score = jax.nn.softmax(score, axis=-1)
    add_value = jnp.einsum("bhnm,bmhd->bnhd", score, v).reshape(B, N, C)
    add_value = conv(add_value, params["wmh"], params["bmh"])
    cat = jnp.concatenate([motion1, add_value], axis=-1)
    h = conv(cat, params["w1"], params["b1"])
    h = (h - params["bn_mean"]) / jnp.sqrt(params["bn_var"] + eps) \
        * params["bn_gamma"] + params["bn_beta"]
    h1 = jax.nn.relu(h)
    return motion1 + conv(h1, params["w2"], params["b2"])


def init_params(key, channels):
    C = channels
    ks = jax.random.split(key, 16)
    nrm = lambda k, shape, s=0.1: (s * jax.random.normal(k, shape)).astype(jnp.float32)
    params = {
        "wq": nrm(ks[0], (C, C)), "bq": nrm(ks[1], (C,)),
        "wk": nrm(ks[2], (C, C)), "bk": nrm(ks[3], (C,)),
        "wv": nrm(ks[4], (C, C)), "bv": nrm(ks[5], (C,)),
        "wmh": nrm(ks[6], (C, C)), "bmh": nrm(ks[7], (C,)),
        "w1": nrm(ks[8], (2 * C, 2 * C)), "b1": nrm(ks[9], (2 * C,)),
        "w2": nrm(ks[10], (2 * C, C)), "b2": nrm(ks[11], (C,)),
        # TODO(synk): BatchNorm1d batch-statistics (training mode) are not modeled;
        # eval-mode running stats are used and fused into w1/b1.
        "bn_gamma": (1.0 + nrm(ks[12], (2 * C,))),
        "bn_beta": nrm(ks[13], (2 * C,)),
        "bn_mean": nrm(ks[14], (2 * C,)),
        "bn_var": (1.0 + jnp.abs(nrm(ks[15], (2 * C,)))),
    }
    return params


if __name__ == "__main__":
    B, C, HEAD, N, M = 2, 32, 4, 16, 16
    key = jax.random.PRNGKey(0)
    k_p, k_m1, k_m2 = jax.random.split(key, 3)
    params = init_params(k_p, C)
    motion1 = jax.random.normal(k_m1, (B, N, C), dtype=jnp.float32)  # channels-last
    motion2 = jax.random.normal(k_m2, (B, M, C), dtype=jnp.float32)

    out = attention_propagation(motion1, motion2, params, head=HEAD)
    out = jax.block_until_ready(out)

    ref = reference(motion1, motion2, params, head=HEAD)
    # Slightly relaxed tolerance to accommodate the approx-reciprocal softmax (EUP path).
    np.testing.assert_allclose(np.asarray(out), np.asarray(ref), rtol=2e-3, atol=2e-3)

    print("KERNEL_OK")
</pallas_src>

<mosaic_0001>
module attributes {stable_mosaic.version = 11 : i64} {
  func.func @attention_propagation_kernel(%arg0: memref<32x32xf32, #tpu.memory_space<vmem>>, %arg1: memref<32x32xf32, #tpu.memory_space<vmem>>, %arg2: memref<200x64xf32, #tpu.memory_space<vmem>>, %arg3: memref<32x128xf32, #tpu.memory_space<vmem>>) attributes {dimension_semantics = [], scalar_prefetch = 0 : i64, scratch_operands = 0 : i64, tpu.core_type = #tpu.core_type<tc>} {
    %c0 = arith.constant 0 : index
    %c0_0 = arith.constant 0 : index
    %0 = vector.load %arg0[%c0, %c0_0] : memref<32x32xf32, #tpu.memory_space<vmem>>, vector<32x32xf32>
    %c0_1 = arith.constant 0 : index
    %c0_2 = arith.constant 0 : index
    %1 = vector.load %arg1[%c0_1, %c0_2] : memref<32x32xf32, #tpu.memory_space<vmem>>, vector<32x32xf32>
    %c0_3 = arith.constant 0 : index
    %c0_4 = arith.constant 0 : index
    %2 = vector.load %arg2[%c0_3, %c0_4] : memref<200x64xf32, #tpu.memory_space<vmem>>, vector<32x32xf32>
    %c32 = arith.constant 32 : index
    %c0_5 = arith.constant 0 : index
    %3 = vector.load %arg2[%c32, %c0_5] : memref<200x64xf32, #tpu.memory_space<vmem>>, vector<32x64xf32>
    %c64 = arith.constant 64 : index
    %c0_6 = arith.constant 0 : index
    %4 = vector.load %arg2[%c64, %c0_6] : memref<200x64xf32, #tpu.memory_space<vmem>>, vector<32x64xf32>
    %c96 = arith.constant 96 : index
    %c0_7 = arith.constant 0 : index
    %5 = vector.load %arg2[%c96, %c0_7] : memref<200x64xf32, #tpu.memory_space<vmem>>, vector<32x64xf32>
    %c128 = arith.constant 128 : index
    %c0_8 = arith.constant 0 : index
    %6 = vector.load %arg2[%c128, %c0_8] : memref<200x64xf32, #tpu.memory_space<vmem>>, vector<64x32xf32>
    %c192 = arith.constant 192 : index
    %c0_9 = arith.constant 0 : index
    %7 = vector.load %arg2[%c192, %c0_9] : memref<200x64xf32, #tpu.memory_space<vmem>>, vector<1x32xf32>
    %c193 = arith.constant 193 : index
    %c0_10 = arith.constant 0 : index
    %8 = vector.load %arg2[%c193, %c0_10] : memref<200x64xf32, #tpu.memory_space<vmem>>, vector<1x64xf32>
    %c194 = arith.constant 194 : index
    %c0_11 = arith.constant 0 : index
    %9 = vector.load %arg2[%c194, %c0_11] : memref<200x64xf32, #tpu.memory_space<vmem>>, vector<1x64xf32>
    %c195 = arith.constant 195 : index
    %c0_12 = arith.constant 0 : index
    %10 = vector.load %arg2[%c195, %c0_12] : memref<200x64xf32, #tpu.memory_space<vmem>>, vector<1x32xf32>
    %cst = arith.constant dense<0.000000e+00> : vector<32x32xf32>
    %11 = tpu.matmul %0, %2, %cst {dimension_numbers = #tpu.dot_dimension_numbers<[1], [0], [0], [1], [0, 0, 1, 1], [], []>} : vector<32x32xf32>, vector<32x32xf32>, vector<32x32xf32> -> vector<32x32xf32>
    %12 = vector.broadcast %7 : vector<1x32xf32> to vector<32x32xf32>
    %13 = arith.addf %11, %12 : vector<32x32xf32>
    %cst_13 = arith.constant dense<0.000000e+00> : vector<32x64xf32>
    %14 = tpu.matmul %1, %3, %cst_13 {dimension_numbers = #tpu.dot_dimension_numbers<[1], [0], [0], [1], [0, 0, 1, 1], [], []>} : vector<32x32xf32>, vector<32x64xf32>, vector<32x64xf32> -> vector<32x64xf32>
    %15 = vector.broadcast %8 : vector<1x64xf32> to vector<32x64xf32>
    %16 = arith.addf %14, %15 : vector<32x64xf32>
    %17 = vector.extract_strided_slice %16 {offsets = [0, 0], sizes = [32, 32], strides = [1, 1]} : vector<32x64xf32> to vector<32x32xf32>
    %18 = vector.extract_strided_slice %16 {offsets = [0, 32], sizes = [32, 32], strides = [1, 1]} : vector<32x64xf32> to vector<32x32xf32>
    %19 = vector.shape_cast %13 : vector<32x32xf32> to vector<2x16x32xf32>
    %20 = vector.shape_cast %17 : vector<32x32xf32> to vector<2x16x32xf32>
    %21 = vector.shape_cast %18 : vector<32x32xf32> to vector<2x16x32xf32>
    %22 = vector.extract_strided_slice %19 {offsets = [0, 0, 0], sizes = [2, 16, 8], strides = [1, 1, 1]} : vector<2x16x32xf32> to vector<2x16x8xf32>
    %23 = vector.extract_strided_slice %19 {offsets = [0, 0, 8], sizes = [2, 16, 8], strides = [1, 1, 1]} : vector<2x16x32xf32> to vector<2x16x8xf32>
    %24 = vector.extract_strided_slice %19 {offsets = [0, 0, 16], sizes = [2, 16, 8], strides = [1, 1, 1]} : vector<2x16x32xf32> to vector<2x16x8xf32>
    %25 = vector.extract_strided_slice %19 {offsets = [0, 0, 24], sizes = [2, 16, 8], strides = [1, 1, 1]} : vector<2x16x32xf32> to vector<2x16x8xf32>
    %26 = tpu.concatenate %22, %23, %24, %25 in 0 : vector<2x16x8xf32>, vector<2x16x8xf32>, vector<2x16x8xf32>, vector<2x16x8xf32> -> vector<8x16x8xf32>
    %27 = vector.extract_strided_slice %20 {offsets = [0, 0, 0], sizes = [2, 16, 8], strides = [1, 1, 1]} : vector<2x16x32xf32> to vector<2x16x8xf32>
    %28 = vector.extract_strided_slice %20 {offsets = [0, 0, 8], sizes = [2, 16, 8], strides = [1, 1, 1]} : vector<2x16x32xf32> to vector<2x16x8xf32>
    %29 = vector.extract_strided_slice %20 {offsets = [0, 0, 16], sizes = [2, 16, 8], strides = [1, 1, 1]} : vector<2x16x32xf32> to vector<2x16x8xf32>
    %30 = vector.extract_strided_slice %20 {offsets = [0, 0, 24], sizes = [2, 16, 8], strides = [1, 1, 1]} : vector<2x16x32xf32> to vector<2x16x8xf32>
    %31 = tpu.concatenate %27, %28, %29, %30 in 0 : vector<2x16x8xf32>, vector<2x16x8xf32>, vector<2x16x8xf32>, vector<2x16x8xf32> -> vector<8x16x8xf32>
    %32 = vector.extract_strided_slice %21 {offsets = [0, 0, 0], sizes = [2, 16, 8], strides = [1, 1, 1]} : vector<2x16x32xf32> to vector<2x16x8xf32>
    %33 = vector.extract_strided_slice %21 {offsets = [0, 0, 8], sizes = [2, 16, 8], strides = [1, 1, 1]} : vector<2x16x32xf32> to vector<2x16x8xf32>
    %34 = vector.extract_strided_slice %21 {offsets = [0, 0, 16], sizes = [2, 16, 8], strides = [1, 1, 1]} : vector<2x16x32xf32> to vector<2x16x8xf32>
    %35 = vector.extract_strided_slice %21 {offsets = [0, 0, 24], sizes = [2, 16, 8], strides = [1, 1, 1]} : vector<2x16x32xf32> to vector<2x16x8xf32>
    %36 = tpu.concatenate %32, %33, %34, %35 in 0 : vector<2x16x8xf32>, vector<2x16x8xf32>, vector<2x16x8xf32>, vector<2x16x8xf32> -> vector<8x16x8xf32>
    "tpu.trace_start"() <{level = 10 : i32, message = "gnd,gmd->gnm"}> : () -> ()
    %cst_14 = arith.constant dense<0.000000e+00> : vector<8x16x16xf32>
    %37 = tpu.matmul %26, %31, %cst_14 {dimension_numbers = #tpu.dot_dimension_numbers<[2], [2], [1], [1], [0, 0, 0, 1, 1, 1], [0], [0]>} : vector<8x16x8xf32>, vector<8x16x8xf32>, vector<8x16x16xf32> -> vector<8x16x16xf32>
    "tpu.trace_stop"() : () -> ()
    %cst_15 = arith.constant dense<0xFF800000> : vector<8x16xf32>
    %38 = vector.multi_reduction <maximumf>, %37, %cst_15 [2] : vector<8x16x16xf32> to vector<8x16xf32>
    %39 = vector.shape_cast %38 : vector<8x16xf32> to vector<8x16x1xf32>
    %40 = vector.broadcast %39 : vector<8x16x1xf32> to vector<8x16x16xf32>
    %41 = arith.subf %37, %40 : vector<8x16x16xf32>
    %42 = math.exp %41 : vector<8x16x16xf32>
    %cst_16 = arith.constant dense<0.000000e+00> : vector<8x16xf32>
    %43 = vector.multi_reduction <add>, %42, %cst_16 [2] : vector<8x16x16xf32> to vector<8x16xf32>
    %44 = vector.shape_cast %43 : vector<8x16xf32> to vector<8x16x1xf32>
    %45 = tpu.reciprocal %44 {approx = true} : vector<8x16x1xf32> -> vector<8x16x1xf32>
    %46 = vector.broadcast %45 : vector<8x16x1xf32> to vector<8x16x16xf32>
    %47 = arith.mulf %42, %46 : vector<8x16x16xf32>
    "tpu.trace_start"() <{level = 10 : i32, message = "gnm,gmd->gnd"}> : () -> ()
    %cst_17 = arith.constant dense<0.000000e+00> : vector<8x16x8xf32>
    %48 = tpu.matmul %47, %36, %cst_17 {dimension_numbers = #tpu.dot_dimension_numbers<[2], [1], [1], [2], [0, 0, 0, 1, 1, 2], [0], [0]>} : vector<8x16x16xf32>, vector<8x16x8xf32>, vector<8x16x8xf32> -> vector<8x16x8xf32>
    "tpu.trace_stop"() : () -> ()
    %cst_18 = arith.constant dense<0.000000e+00> : vector<32x64xf32>
    %49 = tpu.matmul %0, %4, %cst_18 {dimension_numbers = #tpu.dot_dimension_numbers<[1], [0], [0], [1], [0, 0, 1, 1], [], []>} : vector<32x32xf32>, vector<32x64xf32>, vector<32x64xf32> -> vector<32x64xf32>
    %50 = vector.broadcast %9 : vector<1x64xf32> to vector<32x64xf32>
    %51 = arith.addf %49, %50 : vector<32x64xf32>
    %52 = vector.extract_strided_slice %48 {offsets = [0, 0, 0], sizes = [2, 16, 8], strides = [1, 1, 1]} : vector<8x16x8xf32> to vector<2x16x8xf32>
    %53 = vector.shape_cast %52 : vector<2x16x8xf32> to vector<32x8xf32>
    %54 = vector.extract_strided_slice %5 {offsets = [0, 0], sizes = [8, 64], strides = [1, 1]} : vector<32x64xf32> to vector<8x64xf32>
    %cst_19 = arith.constant dense<0.000000e+00> : vector<32x64xf32>
    %55 = tpu.matmul %53, %54, %cst_19 {dimension_numbers = #tpu.dot_dimension_numbers<[1], [0], [0], [1], [0, 0, 1, 1], [], []>} : vector<32x8xf32>, vector<8x64xf32>, vector<32x64xf32> -> vector<32x64xf32>
    %56 = arith.addf %51, %55 : vector<32x64xf32>
    %57 = vector.extract_strided_slice %48 {offsets = [2, 0, 0], sizes = [2, 16, 8], strides = [1, 1, 1]} : vector<8x16x8xf32> to vector<2x16x8xf32>
    %58 = vector.shape_cast %57 : vector<2x16x8xf32> to vector<32x8xf32>
    %59 = vector.extract_strided_slice %5 {offsets = [8, 0], sizes = [8, 64], strides = [1, 1]} : vector<32x64xf32> to vector<8x64xf32>
    %cst_20 = arith.constant dense<0.000000e+00> : vector<32x64xf32>
    %60 = tpu.matmul %58, %59, %cst_20 {dimension_numbers = #tpu.dot_dimension_numbers<[1], [0], [0], [1], [0, 0, 1, 1], [], []>} : vector<32x8xf32>, vector<8x64xf32>, vector<32x64xf32> -> vector<32x64xf32>
    %61 = arith.addf %56, %60 : vector<32x64xf32>
    %62 = vector.extract_strided_slice %48 {offsets = [4, 0, 0], sizes = [2, 16, 8], strides = [1, 1, 1]} : vector<8x16x8xf32> to vector<2x16x8xf32>
    %63 = vector.shape_cast %62 : vector<2x16x8xf32> to vector<32x8xf32>
    %64 = vector.extract_strided_slice %5 {offsets = [16, 0], sizes = [8, 64], strides = [1, 1]} : vector<32x64xf32> to vector<8x64xf32>
    %cst_21 = arith.constant dense<0.000000e+00> : vector<32x64xf32>
    %65 = tpu.matmul %63, %64, %cst_21 {dimension_numbers = #tpu.dot_dimension_numbers<[1], [0], [0], [1], [0, 0, 1, 1], [], []>} : vector<32x8xf32>, vector<8x64xf32>, vector<32x64xf32> -> vector<32x64xf32>
    %66 = arith.addf %61, %65 : vector<32x64xf32>
    %67 = vector.extract_strided_slice %48 {offsets = [6, 0, 0], sizes = [2, 16, 8], strides = [1, 1, 1]} : vector<8x16x8xf32> to vector<2x16x8xf32>
    %68 = vector.shape_cast %67 : vector<2x16x8xf32> to vector<32x8xf32>
    %69 = vector.extract_strided_slice %5 {offsets = [24, 0], sizes = [8, 64], strides = [1, 1]} : vector<32x64xf32> to vector<8x64xf32>
    %cst_22 = arith.constant dense<0.000000e+00> : vector<32x64xf32>
    %70 = tpu.matmul %68, %69, %cst_22 {dimension_numbers = #tpu.dot_dimension_numbers<[1], [0], [0], [1], [0, 0, 1, 1], [], []>} : vector<32x8xf32>, vector<8x64xf32>, vector<32x64xf32> -> vector<32x64xf32>
    %71 = arith.addf %66, %70 : vector<32x64xf32>
    %cst_23 = arith.constant 0.000000e+00 : f32
    %72 = vector.broadcast %cst_23 : f32 to vector<32x64xf32>
    %73 = arith.maximumf %71, %72 : vector<32x64xf32>
    %cst_24 = arith.constant dense<0.000000e+00> : vector<32x32xf32>
    %74 = tpu.matmul %73, %6, %cst_24 {dimension_numbers = #tpu.dot_dimension_numbers<[1], [0], [0], [1], [0, 0, 1, 1], [], []>} : vector<32x64xf32>, vector<64x32xf32>, vector<32x32xf32> -> vector<32x32xf32>
    %75 = arith.addf %0, %74 : vector<32x32xf32>
    %76 = vector.broadcast %10 : vector<1x32xf32> to vector<32x32xf32>
    %77 = arith.addf %75, %76 : vector<32x32xf32>
    %cst_25 = arith.constant 0.000000e+00 : f32
    %78 = vector.broadcast %cst_25 : f32 to vector<32x96xf32>
    %79 = tpu.concatenate %77, %78 in 1 : vector<32x32xf32>, vector<32x96xf32> -> vector<32x128xf32>
    %c0_26 = arith.constant 0 : index
    %c0_27 = arith.constant 0 : index
    %80 = vector.load %arg3[%c0_26, %c0_27] : memref<32x128xf32, #tpu.memory_space<vmem>>, vector<32x128xf32>
    tpu.vector_store %arg3[%c0_26, %c0_27], %79 {strides = array<i32>} : memref<32x128xf32, #tpu.memory_space<vmem>>, vector<32x128xf32>,
    return
  }
}

</mosaic_0001>

<bundles_post_ra>
// kernel: tpu_custom_call.1
= control target key start
LH: loop header
LB: loop body
LE: loop exit
PB: predicated region body
PF: predicated region fallthrough
CT: control target
= control target key end

     0   :  { %vm55_vm0 = vcmask 261120   ;;  %s3508_s0 = inlined_call_operand.vmem [shape: f32[32,32], index: 0, kind: input, shape index: {}]   ;;  %s3509_s1 = inlined_call_operand.vmem [shape: f32[32,32], index: 1, kind: input, shape index: {}]   ;;  %s3510_s2 = inlined_call_operand.vmem [shape: f32[200,64], index: 2, kind: input, shape index: {}]   ;;  %s3511_s3 = inlined_call_operand.hbm [shape: f32[32,128], index: 3, kind: output, shape index: {}]  }
   0x1   :  { %v26_v0 = vld [vmem:[%s3510_s2 + $0x18] sm:$0xff]  ;;  %v25_v1 = vld [vmem:[%s3510_s2 + $0x10] sm:$0xff]  ;;  %v3024_v2 = vld [vmem:[%s3508_s0] sm:$0xff] }
   0x2   :  { %2683 = vmatprep.subr.mxu1 %v26_v0  ;;  %v24_v3 = vld [vmem:[%s3510_s2 + $0x8] sm:$0xff]  ;;  %2691 = vmatprep.mubr.msk.f32.mxu1 %vm55_vm0, %v3024_v2  ;;  %v23_v4 = vld [vmem:[%s3510_s2] sm:$0xff] }
   0x3   :  { %2684 = vmatpush3.msra.mxu1 %v26_v0 }
   0x4   :  { %2685 = vmatprep.subr.mxu1 %v25_v1 }
   0x5   :  { %2686 = vmatpush3.msra.mxu1 %v25_v1 }
   0x6   :  { %2687 = vmatprep.subr.mxu1 %v24_v3 }
   0x7   :  { %8 = vsyncpa [#allocation3], 0  ;;  %2688 = vmatpush3.msra.mxu1 %v24_v3  ;;  %v3037_v5 = vld [vmem:[%s3508_s0 + $0x8] sm:$0xff]  ;;  %v30_v6 = vld [vmem:[%s3510_s2 + $0x38] sm:$0xff]  ;;  %vm310_vm1 = vcmask 64512   ;;  %s2988_s19 = smov 120  }
   0x8   :  { %2689 = vmatprep.subr.mxu1 %v23_v4  ;;  %v3045_v7 = vld [vmem:[%s3508_s0 + $0x10] sm:$0xff]  ;;  %v3057_v9 = vld [vmem:[%s3508_s0 + $0x18] sm:$0xff]  ;;  %v28_v10 = vld [vmem:[%s3510_s2 + $0x28] sm:$0xff]  ;;  %s2989_s21 = smov 112   ;;  %s2990_s22 = smov 104   ;;  %vm975_vm2 = vcmask 130048  }
   0x9   :  { %2690 = vmatpush3.msra.mxu1 %v23_v4  ;;  %v29_v8 = vld [vmem:[%s3510_s2 + $0x30] sm:$0xff]  ;;  %v19_v11 = vld [vmem:[%s3509_s1] sm:$0xff]  ;;  %v20_v13 = vld [vmem:[%s3509_s1 + $0x8] sm:$0xff]  ;;  %s2991_s23 = smov 96   ;;  %vm2345_vm3 = vcmask 523264   ;;  %s2992_s12 = smov [#allocation2]  }
   0xa   :  { %2692 = vmatmul.mubr.msk.f32.vlgmr.msra.gmra.mxu1 %vm55_vm0, %v3037_v5  ;;  %2697 = vmatprep.subr.mxu1 %v30_v6  ;;  %v27_v12 = vld [vmem:[%s3510_s2 + $0x20] sm:$0xff]  ;;  %v21_v14 = vld [vmem:[%s3509_s1 + $0x10] sm:$0xff]  ;;  %v22_v15 = vld [vmem:[%s3509_s1 + $0x18] sm:$0xff]  ;;  %s2468_s13 = sshll.u32 %s2992_s12, 4  ;;  %s2469_s13 = int_to_ptr.vmem [resolvable:$true] %s2468_s13 }
   0xb   :  { %2698 = vmatpush3.msra.mxu1 %v30_v6  ;;  %2694 = vmatprep.mubr.msk.f32.mxu1 %vm55_vm0, %v3045_v7  ;;  %v2479_v16 = vld [vmem:[%s3510_s2 + $0xc0] ss:$0 sm:$0xff]  ;;  %v2484_v23 = vld [vmem:[%s3510_s2 + $0xc1] ss:$0 sm:$0xff]  ;;  %s2966_s14 = scalar_lea.vmem %s2469_s13, 512  ;;  %p2971_p1 = scmp.lt.s32.totalorder %s2469_s13, %s2469_s13 }
   0xc   :  { %2699 = vmatprep.subr.mxu1 %v29_v8  ;;  %p2967_p0 = scmp.ne.s32.totalorder %s2469_s13, %s2966_s14  ;;  %p2972_p2 = scmp.lt.s32.totalorder %s2966_s14, %s2966_s14 }
   0xd   :  { %2700 = vmatpush3.msra.mxu1 %v29_v8 }
   0xe   :  { %2695 = vmatmul.mubr.msk.f32.gmra.mxu1 %vm55_vm0, %v3057_v9  ;;  %2701 = vmatprep.subr.mxu1 %v28_v10  ;;  %p2973_p3 = por %p2972_p2, %p2971_p1 }
   0xf   :  { %2702 = vmatpush3.msra.mxu1 %v28_v10  ;;  %2705 = vmatprep.mubr.msk.f32.mxu1 %vm55_vm0, %v19_v11 }
  0x10   :  { %2703 = vmatprep.subr.mxu1 %v27_v12  ;;  %p2974_p4 = pnand %p2973_p3, %p2967_p0 }
  0x11   :  { %2704 = vmatpush3.msra.mxu1 %v27_v12 }
  0x12   :  { %2706 = vmatmul.mubr.msk.f32.vlgmr.msra.gmra.mxu1 %vm55_vm0, %v20_v13 }
  0x13   :  { %2708 = vmatprep.mubr.msk.f32.mxu1 %vm55_vm0, %v21_v14 }
  0x16   :  { %2709 = vmatmul.mubr.msk.f32.gmra.mxu1 %vm55_vm0, %v22_v15 }
  0xca   :  { %v2693_v17 = vpop.f32.mrf.mxu1 }
  0xcb   :  { %v140_v18 = vadd.f32 %v2693_v17, %v2479_v16 }
  0xcc   :  { %v134_v19 = vpop.f32.mrf.mxu1 }
  0xcd   :  { %v135_v20 = vadd.f32 %v2479_v16, %v134_v19  ;;  %260 = vrot.lane.b32.xlu0 %v140_v18, %s2988_s19 }
  0xce   :  { %v2696_v21 = vpop.f32.mrf.mxu1 }
  0xcf   :  { %258 = vrot.lane.b32.xlu1 %v135_v20, %s2988_s19  ;;  %2715 = vmatprep.mubr.msk.f32.mxu0 %vm310_vm1, %v135_v20  ;;  %v150_v24 = vadd.f32 %v2696_v21, %v2479_v16 }
  0xd0   :  { %v144_v22 = vpop.f32.mrf.mxu1 }
  0xd1   :  { %v145_v25 = vadd.f32 %v2479_v16, %v144_v22  ;;  %268 = vrot.lane.b32.xlu0 %v140_v18, %s2989_s21 }
  0xd2   :  { %v2707_v26 = vpop.f32.mrf.mxu1 }
  0xd3   :  { %v241_v27 = vadd.f32 %v2707_v26, %v2484_v23  ;;  %266 = vrot.lane.b32.xlu1 %v135_v20, %s2989_s21  ;;  %2722 = vmatprep.mubr.msk.f32.mxu1 %vm310_vm1, %v145_v25 }
  0xd4   :  { %v235_v28 = vpop.f32.mrf.mxu1 }
  0xd5   :  { %v236_v29 = vadd.f32 %v2484_v23, %v235_v28  ;;  %264 = vrot.lane.b32.xlu0 %v150_v24, %s2988_s19  ;;  %2711 = vmatprep.subr.msk.mxu0 %vm310_vm1, %v241_v27 }
  0xd6   :  { %v2710_v30 = vpop.f32.mrf.mxu1  ;;  %2712 = vmatpush3.xpose.msk.msra.mxu0 %vm310_vm1, %v241_v27 }
  0xd7   :  { %v251_v31 = vadd.f32 %v2710_v30, %v2484_v23  ;;  %262 = vrot.lane.b32.xlu1 %v145_v25, %s2988_s19  ;;  %2713 = vmatprep.subr.msk.mxu0 %vm310_vm1, %v236_v29 }
  0xd8   :  { %v245_v32 = vpop.f32.mrf.mxu1 }
  0xd9   :  { %288 = vrot.lane.b32.xlu0 %v241_v27, %s2988_s19  ;;  %2718 = vmatprep.subr.msk.mxu1 %vm310_vm1, %v251_v31  ;;  %v246_v33 = vadd.f32 %v2484_v23, %v245_v32 }
  0xda   :  { %2714 = vmatpush3.xpose.msk.msra.mxu0 %vm310_vm1, %v236_v29  ;;  %2719 = vmatpush3.xpose.msk.msra.mxu1 %vm310_vm1, %v251_v31 }
  0xdb   :  { %296 = vrot.lane.b32.xlu1 %v241_v27, %s2989_s21  ;;  %2720 = vmatprep.subr.msk.mxu1 %vm310_vm1, %v246_v33 }
  0xdd   :  { %286 = vrot.lane.b32.xlu0 %v236_v29, %s2988_s19  ;;  %2716 = vmatmul.mubr.msk.f32.vlgmr.msra.gmra.mxu0 %vm310_vm1, %v140_v18 }
  0xde   :  { %2721 = vmatpush3.xpose.msk.msra.mxu1 %vm310_vm1, %v246_v33 }
  0xdf   :  { %304 = vrot.lane.b32.xlu1 %v241_v27, %s2990_s22 }
  0xe1   :  { %294 = vrot.lane.b32.xlu0 %v236_v29, %s2989_s21  ;;  %2723 = vmatmul.mubr.msk.f32.vlgmr.msra.gmra.mxu1 %vm310_vm1, %v150_v24 }
  0xe3   :  { %292 = vrot.lane.b32.xlu1 %v251_v31, %s2988_s19 }
  0xe5   :  { %290 = vrot.lane.b32.xlu0 %v246_v33, %s2988_s19 }
  0xe7   :  { %270 = vrot.lane.b32.xlu1 %v145_v25, %s2989_s21 }
  0xe9   :  { %302 = vrot.lane.b32.xlu0 %v236_v29, %s2990_s22 }
  0xeb   :  { %300 = vrot.lane.b32.xlu1 %v251_v31, %s2989_s21 }
  0xed   :  { %298 = vrot.lane.b32.xlu0 %v246_v33, %s2989_s21 }
  0xef   :  { %308 = vrot.lane.b32.xlu1 %v251_v31, %s2990_s22 }
  0xf1   :  { %272 = vrot.lane.b32.xlu0 %v150_v24, %s2989_s21 }
  0xf3   :  { %274 = vrot.lane.b32.xlu1 %v135_v20, %s2990_s22 }
  0xf5   :  { %276 = vrot.lane.b32.xlu0 %v140_v18, %s2990_s22 }
  0xf7   :  { %306 = vrot.lane.b32.xlu1 %v246_v33, %s2990_s22 }
  0xf9   :  { %278 = vrot.lane.b32.xlu0 %v145_v25, %s2990_s22 }
  0xfb   :  { %280 = vrot.lane.b32.xlu1 %v150_v24, %s2990_s22 }
  0xfd   :  { %1152 = vrot.lane.b32.xlu0 %v236_v29, %s2991_s23 }
  0xff   :  { %1154 = vrot.lane.b32.xlu1 %v241_v27, %s2991_s23 }
 0x103   :  { %1241 = vrot.lane.b32.xlu1 %v251_v31, %s2991_s23 }
 0x107   :  { %1239 = vrot.lane.b32.xlu1 %v246_v33, %s2991_s23 }
 0x13f   :  { %v261_v34 = vpop.permute.xlu0 %260 }
 0x141   :  { %v259_v35 = vpop.permute.xlu1 %258 }
 0x142   :  { %2729 = vmatprep.mubr.msk.f32.mxu0 %vm310_vm1, %v259_v35 }
 0x143   :  { %v269_v36 = vpop.permute.xlu0 %268 }
 0x145   :  { %v267_v37 = vpop.permute.xlu1 %266 }
 0x147   :  { %v265_v38 = vpop.permute.xlu0 %264 }
 0x149   :  { %v263_v39 = vpop.permute.xlu1 %262 }
 0x14a   :  { %2736 = vmatprep.mubr.msk.f32.mxu1 %vm310_vm1, %v263_v39 }
 0x14b   :  { %v289_v40 = vpop.permute.xlu0 %288 }
 0x14c   :  { %2725 = vmatprep.subr.msk.mxu0 %vm310_vm1, %v289_v40  ;;  %1328 = vrot.lane.b32.xlu0 %v289_v40, %s2991_s23 }
 0x14d   :  { %v297_v41 = vpop.permute.xlu1 %296  ;;  %2726 = vmatpush3.xpose.msk.msra.mxu0 %vm310_vm1, %v289_v40 }
 0x14e   :  { %1502 = vrot.lane.b32.xlu1 %v297_v41, %s2991_s23 }
 0x14f   :  { %v287_v42 = vpop.permute.xlu0 %286 }
 0x150   :  { %2727 = vmatprep.subr.msk.mxu0 %vm310_vm1, %v287_v42 }
 0x151   :  { %v3128_v43 = vpop.permute.xlu1 %304  ;;  %2728 = vmatpush3.xpose.msk.msra.mxu0 %vm310_vm1, %v287_v42 }
 0x152   :  { %1326 = vrot.lane.b32.xlu1 %v287_v42, %s2991_s23  ;;  %2739 = vmatprep.subr.msk.mxu0 %vm310_vm1, %v297_v41 }
 0x153   :  { %v295_v44 = vpop.permute.xlu0 %294 }
 0x154   :  { %2730 = vmatmul.mubr.msk.f32.vlgmr.msra.gmra.mxu0 %vm310_vm1, %v261_v34 }
 0x155   :  { %v293_v45 = vpop.permute.xlu1 %292  ;;  %2740 = vmatpush3.xpose.msk.msra.mxu0 %vm310_vm1, %v297_v41  ;;  %2743 = vmatprep.mubr.msk.f32.mxu0 %vm310_vm1, %v267_v37 }
 0x156   :  { %1500 = vrot.lane.b32.xlu1 %v295_v44, %s2991_s23  ;;  %2732 = vmatprep.subr.msk.mxu1 %vm310_vm1, %v293_v45 }
 0x157   :  { %1415 = vrot.lane.b32.xlu0 %v293_v45, %s2991_s23  ;;  %2741 = vmatprep.subr.msk.mxu0 %vm310_vm1, %v295_v44  ;;  %v291_v46 = vpop.permute.xlu0 %290 }
 0x158   :  { %2733 = vmatpush3.xpose.msk.msra.mxu1 %vm310_vm1, %v293_v45 }
 0x159   :  { %2734 = vmatprep.subr.msk.mxu1 %vm310_vm1, %v291_v46  ;;  %v271_v47 = vpop.permute.xlu1 %270  ;;  %2742 = vmatpush3.xpose.msk.msra.mxu0 %vm310_vm1, %v295_v44 }
 0x15a   :  { %2753 = vmatprep.subr.msk.mxu0 %vm310_vm1, %v3128_v43 }
 0x15b   :  { %1413 = vrot.lane.b32.xlu0 %v291_v46, %s2991_s23  ;;  %v3146_v48 = vpop.permute.xlu0 %302 }
 0x15c   :  { %2735 = vmatpush3.xpose.msk.msra.mxu1 %vm310_vm1, %v291_v46  ;;  %2744 = vmatmul.mubr.msk.f32.vlgmr.msra.gmra.mxu0 %vm310_vm1, %v269_v36 }
 0x15d   :  { %v3150_v49 = vpop.permute.xlu1 %300  ;;  %2754 = vmatpush3.xpose.msk.msra.mxu0 %vm310_vm1, %v3128_v43 }
 0x15e   :  { %2746 = vmatprep.subr.msk.mxu1 %vm310_vm1, %v3150_v49  ;;  %2755 = vmatprep.subr.msk.mxu0 %vm310_vm1, %v3146_v48 }
 0x15f   :  { %2737 = vmatmul.mubr.msk.f32.vlgmr.msra.gmra.mxu1 %vm310_vm1, %v265_v38  ;;  %v3159_v50 = vpop.permute.xlu0 %298 }
 0x160   :  { %2747 = vmatpush3.xpose.msk.msra.mxu1 %vm310_vm1, %v3150_v49  ;;  %2750 = vmatprep.mubr.msk.f32.mxu1 %vm310_vm1, %v271_v47 }
 0x161   :  { %2748 = vmatprep.subr.msk.mxu1 %vm310_vm1, %v3159_v50  ;;  %v3166_v51 = vpop.permute.xlu1 %308  ;;  %2756 = vmatpush3.xpose.msk.msra.mxu0 %vm310_vm1, %v3146_v48 }
 0x163   :  { %v273_v52 = vpop.permute.xlu0 %272 }
 0x164   :  { %2749 = vmatpush3.xpose.msk.msra.mxu1 %vm310_vm1, %v3159_v50 }
 0x165   :  { %2760 = vmatprep.subr.msk.mxu1 %vm310_vm1, %v3166_v51  ;;  %v275_v53 = vpop.permute.xlu1 %274 }
 0x166   :  { %2757 = vmatprep.mubr.msk.f32.mxu0 %vm310_vm1, %v275_v53 }
 0x167   :  { %2751 = vmatmul.mubr.msk.f32.vlgmr.msra.gmra.mxu1 %vm310_vm1, %v273_v52  ;;  %v277_v54 = vpop.permute.xlu0 %276 }
 0x168   :  { %2761 = vmatpush3.xpose.msk.msra.mxu1 %vm310_vm1, %v3166_v51  ;;  %2758 = vmatmul.mubr.msk.f32.vlgmr.msra.gmra.mxu0 %vm310_vm1, %v277_v54 }
 0x169   :  { %v3179_v55 = vpop.permute.xlu1 %306 }
 0x16a   :  { %2762 = vmatprep.subr.msk.mxu1 %vm310_vm1, %v3179_v55 }
 0x16b   :  { %v279_v56 = vpop.permute.xlu0 %278 }
 0x16c   :  { %2763 = vmatpush3.xpose.msk.msra.mxu1 %vm310_vm1, %v3179_v55  ;;  %2764 = vmatprep.mubr.msk.f32.mxu1 %vm310_vm1, %v279_v56 }
 0x16d   :  { %v281_v57 = vpop.permute.xlu1 %280 }
 0x16f   :  { %2765 = vmatmul.mubr.msk.f32.vlgmr.msra.gmra.mxu1 %vm310_vm1, %v281_v57  ;;  %v1153_v59 = vpop.permute.xlu0 %1152 }
 0x171   :  { %v1155_v58 = vpop.permute.xlu1 %1154 }
 0x172   :  { %2767 = vmatprep.subr.mxu0 %v1155_v58 }
 0x173   :  { %2768 = vmatpush3.msra.mxu0 %v1155_v58 }
 0x174   :  { %2769 = vmatprep.subr.mxu0 %v1153_v59 }
 0x175   :  { %v1242_v60 = vpop.permute.xlu1 %1241  ;;  %2770 = vmatpush3.msra.mxu0 %v1153_v59 }
 0x176   :  { %2774 = vmatprep.subr.mxu1 %v1242_v60 }
 0x177   :  { %2775 = vmatpush3.msra.mxu1 %v1242_v60 }
 0x179   :  { %v1240_v61 = vpop.permute.xlu1 %1239 }
 0x17a   :  { %2776 = vmatprep.subr.mxu1 %v1240_v61 }
 0x17b   :  { %2777 = vmatpush3.msra.mxu1 %v1240_v61 }
 0x19d   :  { %v2717_v62 = vpop.f32.mrf.mxu0 }
 0x19e   :  { %v979_v63 = vsel %vm975_vm2, %v2717_v62, -inf }
 0x19f   :  { %980 = vmax.xlane.f32.xlu1 %v979_v63  ;;  %v3188_v0 = vpop.f32.mrf.mxu0 }
 0x1a0   :  { %v976_v1 = vsel %vm975_vm2, %v3188_v0, -inf }
 0x1a1   :  { %v2724_v3 = vpop.f32.mrf.mxu1  ;;  %977 = vmax.xlane.f32.xlu0 %v976_v1 }
 0x1a2   :  { %v985_v4 = vsel %vm975_vm2, %v2724_v3, -inf }
 0x1a3   :  { %v3193_v6 = vpop.f32.mrf.mxu1 }
 0x1a4   :  { %v982_v8 = vsel %vm975_vm2, %v3193_v6, -inf }
 0x1a5   :  { %986 = vmax.xlane.f32.xlu0 %v985_v4 }
 0x1a9   :  { %983 = vmax.xlane.f32.xlu0 %v982_v8 }
 0x1be   :  { %v3197_v10 = vpop.permute.xlu0 %1328 }
 0x1bf   :  { %2781 = vmatprep.subr.mxu0 %v3197_v10 }
 0x1c0   :  { %v3249_v34 = vpop.permute.xlu1 %1502 }
 0x1c4   :  { %v3251_v35 = vpop.permute.xlu1 %1326 }
 0x1c8   :  { %v3257_v37 = vpop.permute.xlu1 %1500 }
 0x1c9   :  { %v3200_v11 = vpop.permute.xlu0 %1415 }
 0x1ca   :  { %2788 = vmatprep.subr.mxu1 %v3200_v11 }
 0x1cd   :  { %v3255_v36 = vpop.permute.xlu0 %1413 }
 0x214   :  { %v3203_v12 = vpop.f32.mrf.mxu0 }
 0x215   :  { %v991_v13 = vsel %vm975_vm2, %v3203_v12, -inf }
 0x216   :  { %992 = vmax.xlane.f32.xlu0 %v991_v13  ;;  %v3207_v14 = vpop.f32.mrf.mxu0 }
 0x217   :  { %v988_v15 = vsel %vm975_vm2, %v3207_v14, -inf }
 0x218   :  { %989 = vmax.xlane.f32.xlu1 %v988_v15 }
 0x21c   :  { %v3211_v16 = vpop.f32.mrf.mxu0 }
 0x21d   :  { %v1003_v17 = vsel %vm975_vm2, %v3211_v16, -inf }
 0x21e   :  { %1004 = vmax.xlane.f32.xlu0 %v1003_v17  ;;  %v3215_v18 = vpop.f32.mrf.mxu0 }
 0x21f   :  { %v3217_v19 = vpop.f32.mrf.mxu1  ;;  %v1000_v22 = vsel %vm975_vm2, %v3215_v18, -inf }
 0x220   :  { %v997_v20 = vsel %vm975_vm2, %v3217_v19, -inf }
 0x221   :  { %v3221_v21 = vpop.f32.mrf.mxu1  ;;  %998 = vmax.xlane.f32.xlu1 %v997_v20 }
 0x222   :  { %1001 = vmax.xlane.f32.xlu0 %v1000_v22  ;;  %v994_v23 = vsel %vm975_vm2, %v3221_v21, -inf }
 0x225   :  { %995 = vmax.xlane.f32.xlu1 %v994_v23 }
 0x227   :  { %v3227_v24 = vpop.f32.mrf.mxu1 }
 0x228   :  { %v1009_v25 = vsel %vm975_vm2, %v3227_v24, -inf  ;;  %v3231_v26 = vpop.f32.mrf.mxu0  ;;  %v981_v39 = vpop.xlane.xlu1 %980 }
 0x229   :  { %v3233_v27 = vpop.f32.mrf.mxu1  ;;  %1010 = vmax.xlane.f32.xlu1 %v1009_v25  ;;  %v1015_v28 = vsel %vm975_vm2, %v3231_v26, -inf  ;;  %v1025_v40 = vsub.f32 %v2717_v62, %v981_v39 }
 0x22a   :  { %1016 = vmax.xlane.f32.xlu0 %v1015_v28  ;;  %v3237_v29 = vpop.f32.mrf.mxu0  ;;  %v1006_v30 = vsel %vm975_vm2, %v3233_v27, -inf  ;;  %v978_v38 = vpop.xlane.xlu0 %977 }
 0x22b   :  { %v1012_v31 = vsel %vm975_vm2, %v3237_v29, -inf  ;;  %v1042_v42 = vmul.f32 1.442695, %v1025_v40  ;;  %v1024_v53 = vsub.f32 %v3188_v0, %v978_v38 }
 0x22d   :  { %1007 = vmax.xlane.f32.xlu1 %v1006_v30  ;;  %2898 = vpow2.f32 %v1042_v42  ;;  %v1040_v56 = vmul.f32 1.442695, %v1024_v53 }
 0x22e   :  { %1013 = vmax.xlane.f32.xlu0 %v1012_v31  ;;  %v987_v41 = vpop.xlane.xlu0 %986 }
 0x22f   :  { %v3243_v32 = vpop.f32.mrf.mxu1 }
 0x230   :  { %v1021_v33 = vsel %vm975_vm2, %v3243_v32, -inf }
 0x231   :  { %v3261_v45 = vpop.f32.mrf.mxu1 }
 0x232   :  { %1022 = vmax.xlane.f32.xlu0 %v1021_v33  ;;  %v1018_v46 = vsel %vm975_vm2, %v3261_v45, -inf  ;;  %v984_v54 = vpop.xlane.xlu0 %983 }
 0x233   :  { %v1026_v57 = vsub.f32 %v3193_v6, %v984_v54 }
 0x235   :  { %v1044_v58 = vmul.f32 1.442695, %v1026_v57 }
 0x23a   :  { %v3265_v47 = vpop.eup %2898 }
 0x23e   :  { %1676 = vrot.lane.b32.xlu1 %v3128_v43, %s2991_s23  ;;  %v1027_v43 = vsub.f32 %v2724_v3, %v987_v41 }
 0x240   :  { %v1046_v44 = vmul.f32 1.442695, %v1027_v43 }
 0x242   :  { %2900 = vpow2.f32 %v1046_v44 }
 0x243   :  { %2902 = vpow2.f32 %v1040_v56 }
 0x244   :  { %2904 = vpow2.f32 %v1044_v58 }
 0x248   :  { %1589 = vrot.lane.b32.xlu0 %v3150_v49, %s2991_s23  ;;  %v1075_v49 = vsel %vm975_vm2, %v3265_v47, 0.0 }
 0x24c   :  { %1587 = vrot.lane.b32.xlu0 %v3159_v50, %s2991_s23 }
 0x24f   :  { %v3269_v50 = vpop.eup %2900 }
 0x250   :  { %v1081_v52 = vsel %vm975_vm2, %v3269_v50, 0.0  ;;  %v3277_v59 = vpop.eup %2902 }
 0x251   :  { %v1072_v60 = vsel %vm975_vm2, %v3277_v59, 0.0  ;;  %v3281_v61 = vpop.eup %2904 }
 0x262   :  { %1019 = vmax.xlane.f32.xlu1 %v1018_v46 }
 0x26b   :  { %1076 = vadd.xlane.f32.xlu0 %v1075_v49 }
 0x26f   :  { %1082 = vadd.xlane.f32.xlu0 %v1081_v52 }
 0x273   :  { %1674 = vrot.lane.b32.xlu1 %v3146_v48, %s2991_s23  ;;  %v1078_v48 = vsel %vm975_vm2, %v3281_v61, 0.0 }
 0x297   :  { %1073 = vadd.xlane.f32.xlu1 %v1072_v60 }
 0x29b   :  { %1079 = vadd.xlane.f32.xlu1 %v1078_v48 }
 0x29f   :  { %v993_v62 = vpop.xlane.xlu0 %992 }
 0x2a0   :  { %v1029_v63 = vsub.f32 %v3203_v12, %v993_v62 }
 0x2a1   :  { %v990_v0 = vpop.xlane.xlu1 %989 }
 0x2a2   :  { %v1050_v1 = vmul.f32 1.442695, %v1029_v63  ;;  %v1028_v3 = vsub.f32 %v3207_v14, %v990_v0 }
 0x2a4   :  { %2906 = vpow2.f32 %v1050_v1  ;;  %v1048_v4 = vmul.f32 1.442695, %v1028_v3 }
 0x2a6   :  { %2908 = vpow2.f32 %v1048_v4 }
 0x2a7   :  { %v1005_v6 = vpop.xlane.xlu0 %1004 }
 0x2a8   :  { %v1033_v8 = vsub.f32 %v3211_v16, %v1005_v6 }
 0x2aa   :  { %v1058_v13 = vmul.f32 1.442695, %v1033_v8  ;;  %v999_v15 = vpop.xlane.xlu1 %998 }
 0x2ab   :  { %v1031_v17 = vsub.f32 %v3217_v19, %v999_v15  ;;  %v1002_v20 = vpop.xlane.xlu0 %1001 }
 0x2ac   :  { %2910 = vpow2.f32 %v1058_v13  ;;  %v1032_v22 = vsub.f32 %v3215_v18, %v1002_v20 }
 0x2ad   :  { %v1054_v23 = vmul.f32 1.442695, %v1031_v17 }
 0x2ae   :  { %v1056_v12 = vmul.f32 1.442695, %v1032_v22  ;;  %v996_v25 = vpop.xlane.xlu1 %995 }
 0x2af   :  { %2912 = vpow2.f32 %v1054_v23  ;;  %v1030_v14 = vsub.f32 %v3221_v21, %v996_v25 }
 0x2b0   :  { %2914 = vpow2.f32 %v1056_v12 }
 0x2b1   :  { %v3291_v28 = vpop.eup %2906  ;;  %v1052_v30 = vmul.f32 1.442695, %v1030_v14 }
 0x2b2   :  { %v1011_v31 = vpop.xlane.xlu1 %1010  ;;  %v1087_v16 = vsel %vm975_vm2, %v3291_v28, 0.0 }
 0x2b3   :  { %v3295_v33 = vpop.eup %2908  ;;  %2916 = vpow2.f32 %v1052_v30  ;;  %v1035_v19 = vsub.f32 %v3227_v24, %v1011_v31  ;;  %v1017_v18 = vpop.xlane.xlu0 %1016  ;;  %1088 = vadd.xlane.f32.xlu0 %v1087_v16 }
 0x2b4   :  { %v1037_v38 = vsub.f32 %v3231_v26, %v1017_v18  ;;  %v1084_v21 = vsel %vm975_vm2, %v3295_v33, 0.0 }
 0x2b5   :  { %v1062_v39 = vmul.f32 1.442695, %v1035_v19  ;;  %1085 = vadd.xlane.f32.xlu1 %v1084_v21 }
 0x2b6   :  { %v1066_v40 = vmul.f32 1.442695, %v1037_v38  ;;  %v1008_v41 = vpop.xlane.xlu1 %1007 }
 0x2b7   :  { %2918 = vpow2.f32 %v1062_v39  ;;  %v1034_v42 = vsub.f32 %v3233_v27, %v1008_v41  ;;  %v1014_v43 = vpop.xlane.xlu0 %1013 }
 0x2b8   :  { %2920 = vpow2.f32 %v1066_v40  ;;  %v1036_v44 = vsub.f32 %v3237_v29, %v1014_v43 }
 0x2b9   :  { %v3303_v46 = vpop.eup %2910  ;;  %v1060_v24 = vmul.f32 1.442695, %v1034_v42 }
 0x2ba   :  { %v1064_v49 = vmul.f32 1.442695, %v1036_v44  ;;  %v1099_v26 = vsel %vm975_vm2, %v3303_v46, 0.0  ;;  %v3342_v13 = vpop.permute.xlu1 %1676 }
 0x2bb   :  { %2922 = vpow2.f32 %v1060_v24  ;;  %1100 = vadd.xlane.f32.xlu0 %v1099_v26  ;;  %v1023_v52 = vpop.xlane.xlu0 %1022 }
 0x2bc   :  { %v3307_v53 = vpop.eup %2912  ;;  %2924 = vpow2.f32 %v1064_v49  ;;  %v1039_v54 = vsub.f32 %v3243_v32, %v1023_v52 }
 0x2bd   :  { %v3310_v27 = vpop.eup %2914  ;;  %v1093_v29 = vsel %vm975_vm2, %v3307_v53, 0.0 }
 0x2be   :  { %v1070_v56 = vmul.f32 1.442695, %v1039_v54  ;;  %1094 = vadd.xlane.f32.xlu1 %v1093_v29  ;;  %v1096_v57 = vsel %vm975_vm2, %v3310_v27, 0.0 }
 0x2bf   :  { %1097 = vadd.xlane.f32.xlu0 %v1096_v57  ;;  %v3351_v12 = vpop.permute.xlu0 %1589  ;;  %v34_v57 = vld [vmem:[%s3510_s2 + $0x58] sm:$0xff] }
 0x2c0   :  { %v3316_v58 = vpop.eup %2916  ;;  %2926 = vpow2.f32 %v1070_v56 }
 0x2c1   :  { %v1090_v60 = vsel %vm975_vm2, %v3316_v58, 0.0 }
 0x2c2   :  { %1091 = vadd.xlane.f32.xlu1 %v1090_v60 }
 0x2c3   :  { %v3353_v25 = vpop.permute.xlu0 %1587 }
 0x2c4   :  { %v3320_v48 = vpop.eup %2918 }
 0x2c5   :  { %v3322_v32 = vpop.eup %2920  ;;  %v1105_v62 = vsel %vm975_vm2, %v3320_v48, 0.0 }
 0x2c6   :  { %1106 = vadd.xlane.f32.xlu1 %v1105_v62  ;;  %v1111_v63 = vsel %vm975_vm2, %v3322_v32, 0.0 }
 0x2c7   :  { %1112 = vadd.xlane.f32.xlu0 %v1111_v63 }
 0x2c8   :  { %v3328_v0 = vpop.eup %2922 }
 0x2c9   :  { %v3330_v1 = vpop.eup %2924  ;;  %v1102_v3 = vsel %vm975_vm2, %v3328_v0, 0.0 }
 0x2ca   :  { %1103 = vadd.xlane.f32.xlu1 %v1102_v3  ;;  %v1108_v4 = vsel %vm975_vm2, %v3330_v1, 0.0 }
 0x2cb   :  { %1109 = vadd.xlane.f32.xlu0 %v1108_v4 }
 0x2cd   :  { %v3336_v6 = vpop.eup %2926 }
 0x2ce   :  { %v1117_v8 = vsel %vm975_vm2, %v3336_v6, 0.0 }
 0x2cf   :  { %1118 = vadd.xlane.f32.xlu0 %v1117_v8  ;;  %v33_v8 = vld [vmem:[%s3510_s2 + $0x50] sm:$0xff] }
 0x2e5   :  { %1763 = vrot.lane.b32.xlu0 %v3166_v51, %s2991_s23 }
 0x2eb   :  { %v1020_v15 = vpop.xlane.xlu1 %1019 }
 0x2ec   :  { %v1038_v17 = vsub.f32 %v3261_v45, %v1020_v15 }
 0x2ee   :  { %v1068_v20 = vmul.f32 1.442695, %v1038_v17  ;;  %v37_v17 = vld [vmem:[%s3510_s2 + $0x70] sm:$0xff] }
 0x2ef   :  { %v3355_v14 = vpop.permute.xlu1 %1674 }
 0x2f0   :  { %2928 = vpow2.f32 %v1068_v20 }
 0x2f4   :  { %v1077_v51 = vpop.xlane.xlu0 %1076 }
 0x2f5   :  { %2930 = vrcp.f32 %v1077_v51 }
 0x2f8   :  { %v1083_v30 = vpop.xlane.xlu0 %1082 }
 0x2fd   :  { %v3345_v22 = vpop.eup %2928 }
 0x2fe   :  { %v1114_v23 = vsel %vm975_vm2, %v3345_v22, 0.0 }
 0x2ff   :  { %1115 = vadd.xlane.f32.xlu1 %v1114_v23 }
 0x302   :  { %v2931_v16 = vpop.eup %2930 }
 0x310   :  { %1761 = vrot.lane.b32.xlu1 %v3179_v55, %s2991_s23  ;;  %v1137_v55 = vmul.f32 %v2931_v16, %v3265_v47 }
 0x320   :  { %v1074_v45 = vpop.xlane.xlu1 %1073 }
 0x321   :  { %2932 = vrcp.f32 %v1074_v45 }
 0x322   :  { %2934 = vrcp.f32 %v1083_v30 }
 0x324   :  { %v1080_v31 = vpop.xlane.xlu1 %1079 }
 0x325   :  { %2936 = vrcp.f32 %v1080_v31 }
 0x32e   :  { %v2933_v19 = vpop.eup %2932 }
 0x32f   :  { %v1136_v18 = vmul.f32 %v2933_v19, %v3277_v59  ;;  %v2935_v38 = vpop.eup %2934 }
 0x330   :  { %v1139_v40 = vmul.f32 %v2935_v38, %v3269_v50 }
 0x331   :  { %2771 = vmatprep.mubr.msk.f32.mxu0 %vm975_vm2, %v1136_v18 }
 0x332   :  { %v2937_v21 = vpop.eup %2936  ;;  %2772 = vmatmul.mubr.msk.f32.vlgmr.msra.gmra.mxu0 %vm975_vm2, %v1137_v55 }
 0x333   :  { %2782 = vmatpush3.msra.mxu0 %v3197_v10  ;;  %v1138_v39 = vmul.f32 %v2937_v21, %v3281_v61 }
 0x334   :  { %2783 = vmatprep.subr.mxu0 %v3251_v35 }
 0x335   :  { %2784 = vmatpush3.msra.mxu0 %v3251_v35  ;;  %2778 = vmatprep.mubr.msk.f32.mxu1 %vm975_vm2, %v1138_v39  ;;  %v46_v39 = vld [vmem:[%s3510_s2 + $0xb8] sm:$0xff] }
 0x336   :  { %2795 = vmatprep.subr.mxu0 %v3249_v34  ;;  %2779 = vmatmul.mubr.msk.f32.vlgmr.msra.gmra.mxu1 %vm975_vm2, %v1139_v40  ;;  %v45_v40 = vld [vmem:[%s3510_s2 + $0xb0] sm:$0xff] }
 0x337   :  { %2789 = vmatpush3.msra.mxu1 %v3200_v11 }
 0x338   :  { %2790 = vmatprep.subr.mxu1 %v3255_v36 }
 0x339   :  { %2791 = vmatpush3.msra.mxu1 %v3255_v36 }
 0x33a   :  { %2802 = vmatprep.subr.mxu1 %v3351_v12 }
 0x33c   :  { %v1089_v10 = vpop.xlane.xlu0 %1088 }
 0x33d   :  { %2938 = vrcp.f32 %v1089_v10  ;;  %v44_v10 = vld [vmem:[%s3510_s2 + $0xa8] sm:$0xff] }
 0x33e   :  { %v1086_v47 = vpop.xlane.xlu1 %1085 }
 0x33f   :  { %2940 = vrcp.f32 %v1086_v47  ;;  %v43_v47 = vld [vmem:[%s3510_s2 + $0xa0] sm:$0xff] }
 0x344   :  { %v1101_v50 = vpop.xlane.xlu0 %1100 }
 0x345   :  { %2942 = vrcp.f32 %v1101_v50  ;;  %v42_v50 = vld [vmem:[%s3510_s2 + $0x98] sm:$0xff] }
 0x347   :  { %v1095_v35 = vpop.xlane.xlu1 %1094 }
 0x348   :  { %v1098_v59 = vpop.xlane.xlu0 %1097 }
 0x349   :  { %2944 = vrcp.f32 %v1098_v59  ;;  %v40_v59 = vld [vmem:[%s3510_s2 + $0x88] sm:$0xff] }
 0x34a   :  { %v2939_v61 = vpop.eup %2938  ;;  %2946 = vrcp.f32 %v1095_v35  ;;  %v41_v35 = vld [vmem:[%s3510_s2 + $0x90] sm:$0xff] }
 0x34b   :  { %v1092_v41 = vpop.xlane.xlu1 %1091  ;;  %v1141_v36 = vmul.f32 %v2939_v61, %v3291_v28  ;;  %v39_v61 = vld [vmem:[%s3510_s2 + $0x80] sm:$0xff] }
 0x34c   :  { %v2941_v42 = vpop.eup %2940  ;;  %2948 = vrcp.f32 %v1092_v41 }
 0x34d   :  { %v1140_v11 = vmul.f32 %v2941_v42, %v3295_v33 }
 0x34f   :  { %v1107_v43 = vpop.xlane.xlu1 %1106  ;;  %2785 = vmatprep.mubr.msk.f32.mxu0 %vm975_vm2, %v1140_v11 }
 0x350   :  { %2786 = vmatmul.mubr.msk.f32.vlgmr.msra.gmra.mxu0 %vm975_vm2, %v1141_v36  ;;  %v1113_v44 = vpop.xlane.xlu0 %1112  ;;  %2950 = vrcp.f32 %v1107_v43 }
 0x351   :  { %2796 = vmatpush3.msra.mxu0 %v3249_v34  ;;  %2952 = vrcp.f32 %v1113_v44 }
 0x352   :  { %2797 = vmatprep.subr.mxu0 %v3257_v37  ;;  %v2943_v28 = vpop.eup %2942 }
 0x353   :  { %v1104_v24 = vpop.xlane.xlu1 %1103  ;;  %2798 = vmatpush3.msra.mxu0 %v3257_v37  ;;  %v1145_v54 = vmul.f32 %v2943_v28, %v3303_v46  ;;  %v2537_v28 = vld [vmem:[%s3510_s2 + $0xc2] ss:$0 sm:$0xff] }
 0x354   :  { %2954 = vrcp.f32 %v1104_v24  ;;  %2809 = vmatprep.subr.mxu0 %v3342_v13  ;;  %v1110_v33 = vpop.xlane.xlu0 %1109 }
 0x355   :  { %2956 = vrcp.f32 %v1110_v33 }
 0x356   :  { %v2945_v49 = vpop.eup %2944 }
 0x357   :  { %v1144_v26 = vmul.f32 %v2945_v49, %v3310_v27  ;;  %v2947_v52 = vpop.eup %2946 }
 0x358   :  { %v1119_v29 = vpop.xlane.xlu0 %1118  ;;  %v1143_v56 = vmul.f32 %v2947_v52, %v3307_v53 }
 0x359   :  { %v2949_v34 = vpop.eup %2948  ;;  %2799 = vmatprep.mubr.msk.f32.mxu0 %vm975_vm2, %v1144_v26  ;;  %2958 = vrcp.f32 %v1119_v29 }
 0x35a   :  { %2800 = vmatmul.mubr.msk.f32.vlgmr.msra.gmra.mxu0 %vm975_vm2, %v1145_v54  ;;  %v1142_v37 = vmul.f32 %v2949_v34, %v3316_v58 }
 0x35b   :  { %2810 = vmatpush3.msra.mxu0 %v3342_v13 }
 0x35c   :  { %2792 = vmatprep.mubr.msk.f32.mxu1 %vm975_vm2, %v1142_v37  ;;  %2811 = vmatprep.subr.mxu0 %v3355_v14  ;;  %v1764_v53 = vpop.permute.xlu0 %1763 }
 0x35d   :  { %2793 = vmatmul.mubr.msk.f32.vlgmr.msra.gmra.mxu1 %vm975_vm2, %v1143_v56  ;;  %2812 = vmatpush3.msra.mxu0 %v3355_v14  ;;  %v2951_v46 = vpop.eup %2950 }
 0x35e   :  { %2803 = vmatpush3.msra.mxu1 %v3351_v12  ;;  %2823 = vmatprep.subr.mxu0 %v34_v57  ;;  %v2953_v27 = vpop.eup %2952  ;;  %v1147_v63 = vmul.f32 %v2951_v46, %v3320_v48  ;;  %v32_v48 = vld [vmem:[%s3510_s2 + $0x48] sm:$0xff] }
 0x35f   :  { %2804 = vmatprep.subr.mxu1 %v3353_v25  ;;  %v1149_v4 = vmul.f32 %v2953_v27, %v3322_v32  ;;  %v31_v32 = vld [vmem:[%s3510_s2 + $0x40] sm:$0xff] }
 0x360   :  { %2805 = vmatpush3.msra.mxu1 %v3353_v25 }
 0x361   :  { %v2955_v58 = vpop.eup %2954  ;;  %2816 = vmatprep.subr.mxu1 %v1764_v53 }
 0x362   :  { %v2957_v60 = vpop.eup %2956  ;;  %v1146_v62 = vmul.f32 %v2955_v58, %v3328_v0 }
 0x363   :  { %v1148_v3 = vmul.f32 %v2957_v60, %v3330_v1  ;;  %v35_v1 = vld [vmem:[%s3510_s2 + $0x60] sm:$0xff] }
 0x364   :  { %2806 = vmatprep.mubr.msk.f32.mxu1 %vm975_vm2, %v1146_v62 }
 0x365   :  { %2807 = vmatmul.mubr.msk.f32.vlgmr.msra.gmra.mxu1 %vm975_vm2, %v1147_v63  ;;  %2813 = vmatprep.mubr.msk.f32.mxu0 %vm975_vm2, %v1148_v3 }
 0x366   :  { %2817 = vmatpush3.msra.mxu1 %v1764_v53  ;;  %2814 = vmatmul.mubr.msk.f32.vlgmr.msra.gmra.mxu0 %vm975_vm2, %v1149_v4  ;;  %v2959_v13 = vpop.eup %2958 }
 0x367   :  { %2824 = vmatpush3.msra.mxu0 %v34_v57  ;;  %2831 = vmatprep.mubr.msk.f32.mxu0 %vm55_vm0, %v3024_v2 }
 0x368   :  { %2825 = vmatprep.subr.mxu0 %v33_v8 }
 0x369   :  { %2826 = vmatpush3.msra.mxu0 %v33_v8 }
 0x36a   :  { %2827 = vmatprep.subr.mxu0 %v32_v48 }
 0x36b   :  { %2828 = vmatpush3.msra.mxu0 %v32_v48 }
 0x36c   :  { %2829 = vmatprep.subr.mxu0 %v31_v32 }
 0x36d   :  { %2830 = vmatpush3.msra.mxu0 %v31_v32 }
 0x36e   :  { %2832 = vmatmul.mubr.msk.f32.vlgmr.msra.gmra.mxu0 %vm55_vm0, %v3037_v5  ;;  %2853 = vmatprep.subr.mxu0 %v37_v17 }
 0x36f   :  { %2834 = vmatprep.mubr.msk.f32.mxu0 %vm55_vm0, %v3045_v7  ;;  %v1151_v7 = vmul.f32 %v2959_v13, %v3336_v6  ;;  %2854 = vmatpush3.msra.mxu0 %v37_v17  ;;  %v38_v6 = vld [vmem:[%s3510_s2 + $0x78] sm:$0xff] }
 0x370   :  { %2869 = vmatprep.subr.mxu0 %v46_v39 }
 0x372   :  { %2835 = vmatmul.mubr.msk.f32.gmra.mxu0 %vm55_vm0, %v3057_v9  ;;  %v36_v9 = vld [vmem:[%s3510_s2 + $0x68] sm:$0xff] }
 0x388   :  { %v1116_v2 = vpop.xlane.xlu1 %1115 }
 0x389   :  { %2960 = vrcp.f32 %v1116_v2 }
 0x38c   :  { %v1762_v0 = vpop.permute.xlu1 %1761 }
 0x38d   :  { %2818 = vmatprep.subr.mxu1 %v1762_v0 }
 0x38e   :  { %2819 = vmatpush3.msra.mxu1 %v1762_v0 }
 0x38f   :  { %2837 = vmatprep.subr.mxu1 %v35_v1 }
 0x396   :  { %v2961_v15 = vpop.eup %2960 }
 0x397   :  { %v1150_v5 = vmul.f32 %v2961_v15, %v3345_v22 }
 0x399   :  { %2820 = vmatprep.mubr.msk.f32.mxu1 %vm975_vm2, %v1150_v5 }
 0x39a   :  { %2821 = vmatmul.mubr.msk.f32.vlgmr.msra.gmra.mxu1 %vm975_vm2, %v1151_v7 }
 0x39b   :  { %2838 = vmatpush3.msra.mxu1 %v35_v1 }
 0x39c   :  { %2845 = vmatprep.subr.mxu1 %v36_v9 }
 0x3f2   :  { %v2773_v20 = vpop.f32.mrf.mxu0 }
 0x3f4   :  { %v1230_v22 = vpop.f32.mrf.mxu0 }
 0x3f5   :  { %2839 = vmatprep.mubr.msk.f32.mxu1 %vm310_vm1, %v1230_v22 }
 0x3f6   :  { %v2780_v23 = vpop.f32.mrf.mxu1  ;;  %2840 = vmatmul.mubr.msk.f32.vlgmr.msra.gmra.mxu1 %vm310_vm1, %v2773_v20 }
 0x3f7   :  { %2846 = vmatpush3.msra.mxu1 %v36_v9 }
 0x3f8   :  { %v1317_v12 = vpop.f32.mrf.mxu1  ;;  %2861 = vmatprep.subr.mxu1 %v38_v6 }
 0x3f9   :  { %2842 = vmatprep.mubr.msk.f32.mxu1 %vm310_vm1, %v1317_v12 }
 0x3fa   :  { %2843 = vmatmul.mubr.msk.f32.gmra.mxu1 %vm310_vm1, %v2780_v23 }
 0x410   :  { %v2787_v25 = vpop.f32.mrf.mxu0 }
 0x412   :  { %v1404_v51 = vpop.f32.mrf.mxu0 }
 0x413   :  { %2847 = vmatprep.mubr.msk.f32.mxu1 %vm310_vm1, %v1404_v51  ;;  %v2562_v51 = vld [vmem:[%s3510_s2 + $0xc3] ss:$0 sm:$0xff] }
 0x414   :  { %2848 = vmatmul.mubr.msk.f32.vlgmr.msra.gmra.mxu1 %vm310_vm1, %v2787_v25 }
 0x415   :  { %2862 = vmatpush3.msra.mxu1 %v38_v6 }
 0x41a   :  { %v2801_v14 = vpop.f32.mrf.mxu0 }
 0x41c   :  { %v1578_v45 = vpop.f32.mrf.mxu0 }
 0x41d   :  { %v2794_v30 = vpop.f32.mrf.mxu1  ;;  %2855 = vmatprep.mubr.msk.f32.mxu0 %vm310_vm1, %v1578_v45  ;;  %v2962_v45 = vld [vmem:[%s3508_s0 + $0x8] sm:$0xff] }
 0x41e   :  { %2856 = vmatmul.mubr.msk.f32.vlgmr.msra.gmra.mxu0 %vm310_vm1, %v2801_v14 }
 0x41f   :  { %v1491_v31 = vpop.f32.mrf.mxu1  ;;  %2870 = vmatpush3.msra.mxu0 %v46_v39 }
 0x420   :  { %2850 = vmatprep.mubr.msk.f32.mxu1 %vm310_vm1, %v1491_v31  ;;  %2871 = vmatprep.subr.mxu0 %v45_v40 }
 0x421   :  { %2851 = vmatmul.mubr.msk.f32.gmra.mxu1 %vm310_vm1, %v2794_v30  ;;  %2872 = vmatpush3.msra.mxu0 %v45_v40  ;;  %v2964_v40 = vld [vmem:[%s3508_s0 + $0x18] sm:$0xff] }
 0x422   :  { %2873 = vmatprep.subr.mxu0 %v44_v10 }
 0x423   :  { %2874 = vmatpush3.msra.mxu0 %v44_v10 }
 0x424   :  { %2875 = vmatprep.subr.mxu0 %v43_v47 }
 0x425   :  { %v2808_v16 = vpop.f32.mrf.mxu1  ;;  %2876 = vmatpush3.msra.mxu0 %v43_v47 }
 0x426   :  { %v2815_v19 = vpop.f32.mrf.mxu0  ;;  %2877 = vmatprep.subr.mxu0 %v42_v50 }
 0x427   :  { %v1665_v18 = vpop.f32.mrf.mxu1  ;;  %2878 = vmatpush3.msra.mxu0 %v42_v50 }
 0x428   :  { %2858 = vmatprep.mubr.msk.f32.mxu0 %vm310_vm1, %v1665_v18  ;;  %v1752_v55 = vpop.f32.mrf.mxu0  ;;  %2879 = vmatprep.subr.mxu0 %v41_v35 }
 0x429   :  { %2859 = vmatmul.mubr.msk.f32.gmra.mxu0 %vm310_vm1, %v2808_v16  ;;  %2863 = vmatprep.mubr.msk.f32.mxu1 %vm310_vm1, %v1752_v55 }
 0x42a   :  { %2864 = vmatmul.mubr.msk.f32.vlgmr.msra.gmra.mxu1 %vm310_vm1, %v2815_v19  ;;  %2880 = vmatpush3.msra.mxu0 %v41_v35  ;;  %v2963_v19 = vld [vmem:[%s3508_s0] sm:$0xff]  ;;  %v2965_v35 = vld [vmem:[%s3508_s0 + $0x10] sm:$0xff] }
 0x42b   :  { %2881 = vmatprep.subr.mxu0 %v40_v59 }
 0x42c   :  { %2882 = vmatpush3.msra.mxu0 %v40_v59 }
 0x42d   :  { %2883 = vmatprep.subr.mxu0 %v39_v61 }
 0x42e   :  { %2884 = vmatpush3.msra.mxu0 %v39_v61  ;;  %v2833_v11 = vpop.f32.mrf.mxu0 }
 0x42f   :  { %v1924_v49 = vadd.f32 %v2833_v11, %v2537_v28 }
 0x430   :  { %v1918_v43 = vpop.f32.mrf.mxu0 }
 0x431   :  { %v1919_v54 = vadd.f32 %v2537_v28, %v1918_v43 }
 0x432   :  { %v2836_v24 = vpop.f32.mrf.mxu0 }
 0x433   :  { %v1934_v32 = vadd.f32 %v2836_v24, %v2537_v28 }
 0x434   :  { %v1928_v26 = vpop.f32.mrf.mxu0 }
 0x435   :  { %v1929_v2 = vadd.f32 %v2537_v28, %v1928_v26 }
 0x45a   :  { %v2822_v38 = vpop.f32.mrf.mxu1 }
 0x45c   :  { %v1839_v21 = vpop.f32.mrf.mxu1 }
 0x45d   :  { %2866 = vmatprep.mubr.msk.f32.mxu1 %vm310_vm1, %v1839_v21 }
 0x45e   :  { %2867 = vmatmul.mubr.msk.f32.gmra.mxu1 %vm310_vm1, %v2822_v38 }
 0x4b6   :  { %v2841_v41 = vpop.f32.mrf.mxu1 }
 0x4b7   :  { %v2035_v37 = vadd.f32 %v2841_v41, %v1924_v49 }
 0x4b8   :  { %v2015_v42 = vpop.f32.mrf.mxu1 }
 0x4b9   :  { %v2034_v56 = vadd.f32 %v2015_v42, %v1919_v54 }
 0x4ba   :  { %v2844_v36 = vpop.f32.mrf.mxu1 }
 0x4bb   :  { %v2037_v1 = vadd.f32 %v2844_v36, %v1934_v32 }
 0x4bc   :  { %v2025_v44 = vpop.f32.mrf.mxu1 }
 0x4bd   :  { %v2036_v13 = vadd.f32 %v2025_v44, %v1929_v2 }
 0x4d4   :  { %v2849_v33 = vpop.f32.mrf.mxu1 }
 0x4d5   :  { %v2136_v57 = vadd.f32 %v2849_v33, %v2035_v37 }
 0x4d6   :  { %v2116_v52 = vpop.f32.mrf.mxu1 }
 0x4d7   :  { %v2135_v53 = vadd.f32 %v2116_v52, %v2034_v56 }
 0x4de   :  { %v2857_v34 = vpop.f32.mrf.mxu0 }
 0x4df   :  { %v2237_v58 = vadd.f32 %v2857_v34, %v2136_v57 }
 0x4e0   :  { %v2217_v46 = vpop.f32.mrf.mxu0 }
 0x4e1   :  { %v2852_v29 = vpop.f32.mrf.mxu1  ;;  %v2236_v62 = vadd.f32 %v2217_v46, %v2135_v53 }
 0x4e2   :  { %v2138_v15 = vadd.f32 %v2852_v29, %v2037_v1 }
 0x4e3   :  { %v2126_v27 = vpop.f32.mrf.mxu1 }
 0x4e4   :  { %v2137_v7 = vadd.f32 %v2126_v27, %v2036_v13 }
 0x4e9   :  { %v2860_v0 = vpop.f32.mrf.mxu0 }
 0x4ea   :  { %v2865_v60 = vpop.f32.mrf.mxu1  ;;  %v2239_v9 = vadd.f32 %v2860_v0, %v2138_v15 }
 0x4eb   :  { %v2338_v63 = vadd.f32 %v2865_v60, %v2237_v58  ;;  %v2227_v5 = vpop.f32.mrf.mxu0 }
 0x4ec   :  { %v2318_v3 = vpop.f32.mrf.mxu1  ;;  %v2238_v20 = vadd.f32 %v2227_v5, %v2137_v7 }
 0x4ed   :  { %v2337_v4 = vadd.f32 %v2318_v3, %v2236_v62  ;;  %v2342_v48 = vmax.f32 %v2338_v63, 0.0 }
 0x4ef   :  { %v2341_v8 = vmax.f32 %v2337_v4, 0.0 }
 0x4f1   :  { %2885 = vmatprep.mubr.msk.f32.mxu0 %vm2345_vm3, %v2341_v8 }
 0x4f2   :  { %2886 = vmatmul.mubr.msk.f32.vlgmr.msra.gmra.mxu0 %vm2345_vm3, %v2342_v48 }
 0x51e   :  { %v2868_v17 = vpop.f32.mrf.mxu1 }
 0x51f   :  { %v2340_v22 = vadd.f32 %v2868_v17, %v2239_v9 }
 0x520   :  { %v2328_v6 = vpop.f32.mrf.mxu1 }
 0x521   :  { %v2339_v23 = vadd.f32 %v2328_v6, %v2238_v20  ;;  %v2344_v25 = vmax.f32 %v2340_v22, 0.0 }
 0x523   :  { %v2343_v12 = vmax.f32 %v2339_v23, 0.0 }
 0x525   :  { %2888 = vmatprep.mubr.msk.f32.mxu0 %vm2345_vm3, %v2343_v12 }
 0x526   :  { %2889 = vmatmul.mubr.msk.f32.gmra.mxu0 %vm2345_vm3, %v2344_v25 }
 0x5b2   :  { %v2887_v14 = vpop.f32.mrf.mxu0 }
 0x5b3   :  { %v2444_v30 = vadd.f32 %v2962_v45, %v2887_v14 }
 0x5b4   :  { %v2424_v31 = vpop.f32.mrf.mxu0 }
 0x5b5   :  { %v2452_v16 = vadd.f32 %v2562_v51, %v2444_v30  ;;  %v2443_v18 = vadd.f32 %v2963_v19, %v2424_v31 }
 0x5b7   :  { %v2456_v55 = vsel %vm55_vm0, %v2452_v16, 0.0  ;;  %v2451_v38 = vadd.f32 %v2562_v51, %v2443_v18 }
 0x5b8   :  { %2460 = vst [vmem:[#allocation2 + $0x8] sm:$0xff] %v2456_v55 }
 0x5b9   :  { %v2455_v21 = vsel %vm55_vm0, %v2451_v38, 0.0 }
 0x5ba   :  { %2459 = vst [vmem:[#allocation2] sm:$0xff] %v2455_v21 }
 0x5e6   :  { %v2890_v39 = vpop.f32.mrf.mxu0 }
 0x5e7   :  { %v2446_v10 = vadd.f32 %v2964_v40, %v2890_v39 }
 0x5e8   :  { %v2434_v47 = vpop.f32.mrf.mxu0 }
 0x5e9   :  { %v2454_v50 = vadd.f32 %v2562_v51, %v2446_v10  ;;  %v2445_v59 = vadd.f32 %v2965_v35, %v2434_v47 }
 0x5eb   :  { %v2458_v61 = vsel %vm55_vm0, %v2454_v50, 0.0  ;;  %v2453_v41 = vadd.f32 %v2562_v51, %v2445_v59 }
 0x5ec   :  { %2462 = vst [vmem:[#allocation2 + $0x18] sm:$0xff] %v2458_v61 }
 0x5ed   :  { %v2457_v42 = vsel %vm55_vm0, %v2453_v41, 0.0 }
 0x5ee   :  { %2461 = vst [vmem:[#allocation2 + $0x10] sm:$0xff] %v2457_v42 }
 0x5ef   :  { %2977 = shalt.err (!%p2974_p4)
}
 0x5f0   :  { %s2993_s15 = smov 128   ;;  %s2994_s0 = smov 8  }
 0x5f1   :  { %2474 = dma.vmem_to_hbm [thread:$0]  %s2469_s13, 512, %s3511_s3, [#allocation3], %s2993_s15, %s2993_s15, %s2994_s0  }
 0x5f2   :  { %2986 = dma.done.wait [#allocation3], 512  }
 0x5f3   :  { %2987 = vsyncadd [#allocation3], 4294966784 }
 0x5f4   :  { %2478 = vsyncpa [#allocation3], 1 }

</bundles_post_ra>
